<compile_context>
chip_gen: v5e
topology: v5e:2x2
jax: 0.10.0
libtpu: 0.0.40
codegen_flags: <defaults>
</compile_context>

<pallas_src>
import jax
import jax.numpy as jnp
from jax.experimental import pallas as pl
from jax.experimental.pallas import tpu as pltpu  # noqa: F401  (kept for TPU-specific params if needed)

LANE = 128  # TPU lane width; pad the output-feature axis to this for dense stores.


def _observer_kernel(x_ref, w_ref, b_ref, o_ref):
    # x_ref: (B, K) flattened input
    # w_ref: (K, N_pad)  pre-transposed, zero-padded weight
    # b_ref: (1, N_pad)  zero-padded bias
    # o_ref: (B, N_pad)  lane-dense output tile
    acc = jnp.dot(x_ref[...], w_ref[...], preferred_element_type=jnp.float32)
    o_ref[...] = (acc + b_ref[...]).astype(o_ref.dtype)


def prepare_observer_params(weight, bias, n_pad=LANE):
    """One-time (init-time) parameter layout prep.

    weight : (out_features, in_features)  -- PyTorch nn.Linear layout
    bias   : (out_features,)
    returns (w_t_pad: (in_features, n_pad), b_pad: (1, n_pad))
    Padded columns are zero, so the extra output lanes are exactly zero and
    are sliced away in the wrapper.
    """
    out_features, in_features = weight.shape
    assert out_features <= n_pad, f"out_features={out_features} > n_pad={n_pad}"
    w_t = weight.T  # (K, N) — done once, not per forward call
    w_t_pad = jnp.zeros((in_features, n_pad), dtype=weight.dtype).at[:, :out_features].set(w_t)
    b_pad = jnp.zeros((1, n_pad), dtype=bias.dtype).at[0, :out_features].set(bias)
    return w_t_pad, b_pad


def observer_forward(x, w_t_pad, b_pad, out_features):
    """
    Hot-path forward.

    x        : (B, C, H, W) float32 (NCHW), with C*H*W == in_features
    w_t_pad  : (in_features, N_pad) float32  (from prepare_observer_params)
    b_pad    : (1, N_pad) float32
    returns  : (B, out_features) float32
    """
    B = x.shape[0]
    x_flat = x.reshape(B, -1)  # Flatten: view(B, -1) — free reshape
    K = x_flat.shape[1]
    n_pad = w_t_pad.shape[1]
    assert w_t_pad.shape[0] == K, f"expected in_features={K}, got {w_t_pad.shape[0]}"

    # Gridless pallas_call: whole arrays live in VMEM as single blocks — no
    # pipeline machinery, no per-step overhead. Output tile is lane-dense
    # (B, n_pad) so the store is unmasked.
    out_padded = pl.pallas_call(
        _observer_kernel,
        out_shape=jax.ShapeDtypeStruct((B, n_pad), x.dtype),
    )(x_flat, w_t_pad, b_pad)

    return out_padded[:, :out_features]


if __name__ == "__main__":
    # Module defaults: input_channels (in_features) = 288, output_channels = 10.
    # NCHW input whose flattened size is 288: (B=2, C=2, H=12, W=12).
    B, C, H, W = 2, 2, 12, 12
    in_features = C * H * W            # 288
    out_features = 10

    key = jax.random.PRNGKey(0)
    kx, kw, kb = jax.random.split(key, 3)

    x = jax.random.normal(kx, (B, C, H, W), dtype=jnp.float32)

    # Deterministic parameter init mimicking torch.nn.Linear default:
    # U(-1/sqrt(in_features), 1/sqrt(in_features)) for both weight and bias.
    bound = 1.0 / jnp.sqrt(jnp.float32(in_features))
    weight = jax.random.uniform(
        kw, (out_features, in_features), dtype=jnp.float32, minval=-bound, maxval=bound
    )
    bias = jax.random.uniform(
        kb, (out_features,), dtype=jnp.float32, minval=-bound, maxval=bound
    )

    # One-time parameter layout prep (transpose + pad) — NOT part of the hot path.
    w_t_pad, b_pad = prepare_observer_params(weight, bias)

    y = observer_forward(x, w_t_pad, b_pad, out_features)
    y = jax.block_until_ready(y)

    # Sanity-check against the plain-JAX reference of the PyTorch forward.
    y_ref = x.reshape(B, -1) @ weight.T + bias
    assert y.shape == (B, out_features)
    assert jnp.allclose(y, y_ref, atol=1e-5, rtol=1e-5), "mismatch vs reference"

    print("KERNEL_OK")
</pallas_src>

<mosaic_0001>
module attributes {stable_mosaic.version = 11 : i64} {
  func.func @_observer_kernel(%arg0: memref<2x288xf32, #tpu.memory_space<vmem>>, %arg1: memref<288x128xf32, #tpu.memory_space<vmem>>, %arg2: memref<1x128xf32, #tpu.memory_space<vmem>>, %arg3: memref<2x128xf32, #tpu.memory_space<vmem>>) attributes {dimension_semantics = [], scalar_prefetch = 0 : i64, scratch_operands = 0 : i64, tpu.core_type = #tpu.core_type<tc>} {
    %c0 = arith.constant 0 : index
    %c0_0 = arith.constant 0 : index
    %0 = vector.load %arg0[%c0, %c0_0] : memref<2x288xf32, #tpu.memory_space<vmem>>, vector<2x288xf32>
    %c0_1 = arith.constant 0 : index
    %c0_2 = arith.constant 0 : index
    %1 = vector.load %arg1[%c0_1, %c0_2] : memref<288x128xf32, #tpu.memory_space<vmem>>, vector<288x128xf32>
    %cst = arith.constant dense<0.000000e+00> : vector<2x128xf32>
    %2 = tpu.matmul %0, %1, %cst {dimension_numbers = #tpu.dot_dimension_numbers<[1], [0], [0], [1], [0, 0, 1, 1], [], []>} : vector<2x288xf32>, vector<288x128xf32>, vector<2x128xf32> -> vector<2x128xf32>
    %c0_3 = arith.constant 0 : index
    %c0_4 = arith.constant 0 : index
    %3 = vector.load %arg2[%c0_3, %c0_4] : memref<1x128xf32, #tpu.memory_space<vmem>>, vector<1x128xf32>
    %4 = vector.broadcast %3 : vector<1x128xf32> to vector<2x128xf32>
    %5 = arith.addf %2, %4 : vector<2x128xf32>
    %c0_5 = arith.constant 0 : index
    %c0_6 = arith.constant 0 : index
    %6 = vector.load %arg3[%c0_5, %c0_6] : memref<2x128xf32, #tpu.memory_space<vmem>>, vector<2x128xf32>
    tpu.vector_store %arg3[%c0_5, %c0_6], %5 {strides = array<i32>} : memref<2x128xf32, #tpu.memory_space<vmem>>, vector<2x128xf32>,
    return
  }
}

</mosaic_0001>

<bundles_post_ra>
// kernel: tpu_custom_call.1
= control target key start
LH: loop header
LB: loop body
LE: loop exit
PB: predicated region body
PF: predicated region fallthrough
CT: control target
= control target key end

     0   :  { %8 = vsyncpa [#allocation3], 0  ;;  %s297_s0 = inlined_call_operand.hbm [shape: f32[2,288], index: 0, kind: input, shape index: {}]   ;;  %s298_s1 = inlined_call_operand.hbm [shape: f32[288,128], index: 1, kind: input, shape index: {}]   ;;  %s299_s2 = inlined_call_operand.vmem [shape: f32[1,128], index: 2, kind: input, shape index: {}]   ;;  %s300_s3 = inlined_call_operand.hbm [shape: f32[2,128], index: 3, kind: output, shape index: {}]  }
   0x1   :  { %9 = vsyncpa [#allocation6], 0 }
   0x2   :  { %10 = vsyncpa [#allocation4], 0  ;;  %s16_s14 = sshll.u32 %s297_s0, 4  ;;  %s260_s15 = smov [#allocation2]   ;;  %s17_s14 = int_to_ptr.hbm [resolvable:$true] %s16_s14 }
   0x3   :  { %s18_s16 = sshll.u32 %s260_s15, 4  ;;  %s26_s19 = sshll.u32 %s298_s1, 4  ;;  %s19_s16 = int_to_ptr.vmem [resolvable:$true] %s18_s16  ;;  %s27_s19 = int_to_ptr.hbm [resolvable:$true] %s26_s19 }
   0x4   :  { %21 = dma.hbm_to_vmem [thread:$0]  %s17_s14, 96, %s19_s16, [#allocation3]  }
   0x5   :  { %s261_s20 = smov [#allocation5]   ;;  %s262_s22 = smov 128  }
   0x6   :  { %s28_s21 = sshll.u32 %s261_s20, 4  ;;  %s263_s23 = smov 8   ;;  %s29_s21 = int_to_ptr.vmem [resolvable:$true] %s28_s21 }
   0x7   :  { %34 = dma.hbm_to_vmem [thread:$0]  %s27_s19, 4608, %s29_s21, [#allocation6], %s262_s22, %s262_s22, %s263_s23  }
   0x8   :  { %254 = dma.done.wait [#allocation3], 96  }
   0x9   :  { %255 = vsyncadd [#allocation3], 4294967200 }
   0xa   :  { %256 = dma.done.wait [#allocation6], 4608  }
   0xb   :  { %257 = vsyncadd [#allocation6], 4294962688  ;;  %v61_v0 = vld [vmem:[#allocation5 + $0x78] sm:$0xff]  ;;  %v60_v1 = vld [vmem:[#allocation5 + $0x70] sm:$0xff]  ;;  %vm93_vm0 = vcmask 261120   ;;  %s264_s24 = smov [#allocation7]  }
   0xc   :  { %v77_v2 = vld [vmem:[#allocation5 + $0xf8] sm:$0xff]  ;;  %96 = vmatpush.msra.mxu0 %v61_v0  ;;  %v76_v3 = vld [vmem:[#allocation5 + $0xf0] sm:$0xff]  ;;  %v59_v4 = vld [vmem:[#allocation5 + $0x68] sm:$0xff]  ;;  %s162_s25 = sshll.u32 %s264_s24, 4  ;;  %s164_s28 = sshll.u32 %s300_s3, 4  ;;  %s163_s25 = int_to_ptr.vmem [resolvable:$true] %s162_s25  ;;  %s165_s28 = int_to_ptr.hbm [resolvable:$true] %s164_s28 }
   0xd   :  { %116 = vmatpush.msra.mxu1 %v77_v2  ;;  %v75_v5 = vld [vmem:[#allocation5 + $0xe8] sm:$0xff]  ;;  %v58_v6 = vld [vmem:[#allocation5 + $0x60] sm:$0xff]  ;;  %v57_v8 = vld [vmem:[#allocation5 + $0x58] sm:$0xff] }
   0xe   :  { %97 = vmatpush.msra.mxu0 %v60_v1  ;;  %v74_v7 = vld [vmem:[#allocation5 + $0xe0] sm:$0xff]  ;;  %v73_v9 = vld [vmem:[#allocation5 + $0xd8] sm:$0xff]  ;;  %v56_v11 = vld [vmem:[#allocation5 + $0x50] sm:$0xff] }
   0xf   :  { %117 = vmatpush.msra.mxu1 %v76_v3  ;;  %v81_v10 = vld [vmem:[#allocation5 + $0x118] sm:$0xff]  ;;  %v72_v12 = vld [vmem:[#allocation5 + $0xd0] sm:$0xff]  ;;  %v79_v14 = vld [vmem:[#allocation5 + $0x108] sm:$0xff] }
  0x10   :  { %98 = vmatpush.msra.mxu0 %v59_v4  ;;  %148 = vmatpush.msra.mxu2 %v81_v10  ;;  %v80_v13 = vld [vmem:[#allocation5 + $0x110] sm:$0xff]  ;;  %v55_v15 = vld [vmem:[#allocation5 + $0x48] sm:$0xff]  ;;  %v78_v17 = vld [vmem:[#allocation5 + $0x100] sm:$0xff] }
  0x11   :  { %118 = vmatpush.msra.mxu1 %v75_v5  ;;  %v71_v16 = vld [vmem:[#allocation5 + $0xc8] sm:$0xff]  ;;  %v45_v18 = vld [vmem:[#allocation2] sm:$0x3f]  ;;  %v54_v19 = vld [vmem:[#allocation5 + $0x40] sm:$0xff] }
  0x12   :  { %99 = vmatpush.msra.mxu0 %v58_v6  ;;  %149 = vmatpush.msra.mxu2 %v80_v13  ;;  %v70_v20 = vld [vmem:[#allocation5 + $0xc0] sm:$0xff]  ;;  %87 = vst [vmem:[#allocation1] ss:$4 sm:$0xff] %v45_v18  ;;  %v53_v21 = vld [vmem:[#allocation5 + $0x38] sm:$0xff]  ;;  %v52_v23 = vld [vmem:[#allocation5 + $0x30] sm:$0xff] }
  0x13   :  { %119 = vmatpush.msra.mxu1 %v74_v7  ;;  %v69_v22 = vld [vmem:[#allocation5 + $0xb8] sm:$0xff]  ;;  %v68_v24 = vld [vmem:[#allocation5 + $0xb0] sm:$0xff]  ;;  %v51_v25 = vld [vmem:[#allocation5 + $0x28] sm:$0xff] }
  0x14   :  { %100 = vmatpush.msra.mxu0 %v57_v8  ;;  %150 = vmatpush.msra.mxu2 %v79_v14  ;;  %v67_v26 = vld [vmem:[#allocation5 + $0xa8] sm:$0xff]  ;;  %v50_v28 = vld [vmem:[#allocation5 + $0x20] sm:$0xff]  ;;  %v49_v30 = vld [vmem:[#allocation5 + $0x18] sm:$0xff] }
  0x15   :  { %120 = vmatpush.msra.mxu1 %v73_v9  ;;  %v66_v29 = vld [vmem:[#allocation5 + $0xa0] sm:$0xff]  ;;  %v65_v31 = vld [vmem:[#allocation5 + $0x98] sm:$0xff]  ;;  %v48_v32 = vld [vmem:[#allocation5 + $0x10] sm:$0xff] }
  0x16   :  { %101 = vmatpush.msra.mxu0 %v56_v11  ;;  %151 = vmatpush.msra.mxu2 %v78_v17  ;;  %v64_v33 = vld [vmem:[#allocation5 + $0x90] sm:$0xff]  ;;  %v47_v34 = vld [vmem:[#allocation5 + $0x8] sm:$0xff]  ;;  %v46_v36 = vld [vmem:[#allocation5] sm:$0xff] }
  0x17   :  { %121 = vmatpush.msra.mxu1 %v72_v12  ;;  %v63_v35 = vld [vmem:[#allocation5 + $0x88] sm:$0xff]  ;;  %v62_v37 = vld [vmem:[#allocation5 + $0x80] sm:$0xff]  ;;  %v181_v40 = vld [vmem:[%s299_s2] ss:$0 sm:$0xff] }
  0x18   :  { %102 = vmatpush.msra.mxu0 %v55_v15 }
  0x19   :  { %122 = vmatpush.msra.mxu1 %v71_v16  ;;  %v90_v27 = vld.sshfl [vmem:[#allocation1 + $0x10] sm:$0xff pattern:$0x73625140]  ;;  %v88_v38 = vld.sshfl [vmem:[#allocation1] sm:$0xff pattern:$0x73625140] }
  0x1a   :  { %103 = vmatpush.msra.mxu0 %v54_v19  ;;  %175 = vmatmul.msk.f32.vlgmr.msra.gmra.mxu2 %vm93_vm0, %v90_v27  ;;  %v89_v39 = vld.sshfl [vmem:[#allocation1 + $0x8] sm:$0xff pattern:$0x73625140] }
  0x1b   :  { %123 = vmatpush.msra.mxu1 %v70_v20 }
  0x1c   :  { %104 = vmatpush.msra.mxu0 %v53_v21 }
  0x1d   :  { %124 = vmatpush.msra.mxu1 %v69_v22 }
  0x1e   :  { %105 = vmatpush.msra.mxu0 %v52_v23 }
  0x1f   :  { %125 = vmatpush.msra.mxu1 %v68_v24 }
  0x20   :  { %106 = vmatpush.msra.mxu0 %v51_v25 }
  0x21   :  { %126 = vmatpush.msra.mxu1 %v67_v26 }
  0x22   :  { %107 = vmatpush.msra.mxu0 %v50_v28 }
  0x23   :  { %127 = vmatpush.msra.mxu1 %v66_v29 }
  0x24   :  { %108 = vmatpush.msra.mxu0 %v49_v30 }
  0x25   :  { %128 = vmatpush.msra.mxu1 %v65_v31 }
  0x26   :  { %109 = vmatpush.msra.mxu0 %v48_v32 }
  0x27   :  { %129 = vmatpush.msra.mxu1 %v64_v33 }
  0x28   :  { %110 = vmatpush.msra.mxu0 %v47_v34 }
  0x29   :  { %130 = vmatpush.msra.mxu1 %v63_v35 }
  0x2a   :  { %111 = vmatpush.msra.mxu0 %v46_v36 }
  0x2b   :  { %131 = vmatpush.msra.mxu1 %v62_v37  ;;  %112 = vmatmul.f32.vlgmr.msra.gmra.mxu0 %v88_v38 }
  0x2c   :  { %132 = vmatmul.f32.vlgmr.msra.gmra.mxu1 %v89_v39 }
  0x9d   :  { %v153_v44 = vpop.f32.mrf.mxu2 }
  0xa8   :  { %v113_v41 = vpop.f32.mrf.mxu0 }
  0xa9   :  { %v133_v42 = vpop.f32.mrf.mxu1  ;;  %v114_v43 = vadd.f32 %v181_v40, %v113_v41 }
  0xab   :  { %v134_v45 = vadd.f32 %v133_v42, %v114_v43 }
  0xad   :  { %v154_v46 = vadd.f32 %v153_v44, %v134_v45 }
  0xaf   :  { %156 = vst [vmem:[#allocation7] sm:$0x3] %v154_v46 }
  0xb0   :  { %167 = dma.vmem_to_hbm [thread:$0]  %s163_s25, 32, %s165_s28, [#allocation4]  }
  0xb1   :  { %258 = dma.done.wait [#allocation4], 32  }
  0xb2   :  { %259 = vsyncadd [#allocation4], 4294967264 }
  0xb3   :  { %172 = vsyncpa [#allocation3], 1 }
  0xb4   :  { %173 = vsyncpa [#allocation6], 1 }
  0xb5   :  { %174 = vsyncpa [#allocation4], 1 }

</bundles_post_ra>
